<compile_context>
chip_gen: v6e
topology: v6e:2x2x1
jax: 0.10.0
libtpu: 0.0.40
codegen_flags: <defaults>
</compile_context>

<pallas_src>
import math

import jax
import jax.numpy as jnp
from jax import lax
from jax.experimental import pallas as pl
from jax.experimental.pallas import tpu as pltpu


# ----------------------------------------------------------------------------
# helpers
# ----------------------------------------------------------------------------
_ROW_TILES = (256, 128, 64, 32, 16, 8)
_COL_TILES = (256, 128)
_K_TILES = (512, 256, 128)
_NEG_INF = -1e30  # large-but-finite: avoids -inf/NaN for fully-masked rows


def _pick_tile(dim, candidates):
    """Largest candidate that evenly divides `dim`, else the full extent."""
    for c in candidates:
        if dim % c == 0:
            return c
    return dim


# ----------------------------------------------------------------------------
# Tiled linear projection:  y = x @ W^T + b
# ----------------------------------------------------------------------------
def _make_linear_kernel(compute_dtype):
    def kernel(x_ref, w_ref, b_ref, o_ref, acc_ref):
        @pl.when(pl.program_id(2) == 0)
        def _():
            acc_ref[...] = jnp.zeros_like(acc_ref)

        acc_ref[...] += jnp.dot(
            x_ref[...].astype(compute_dtype),
            w_ref[...].astype(compute_dtype),
            preferred_element_type=jnp.float32,
        )

        @pl.when(pl.program_id(2) == pl.num_programs(2) - 1)
        def _():
            o_ref[...] = (acc_ref[...] + b_ref[...]).astype(o_ref.dtype)

    return kernel


def pallas_linear(x2d, w_t, b, *, compute_dtype=jnp.float32, out_dtype=jnp.float32):
    """x2d: [M, Din], w_t: [Din, Dout] (already-transposed weight), b: [Dout]."""
    M, Din = x2d.shape
    Dout = w_t.shape[1]
    tm = _pick_tile(M, _ROW_TILES)
    tn = _pick_tile(Dout, _COL_TILES)
    tk = _pick_tile(Din, _K_TILES)
    grid = (M // tm, Dout // tn, Din // tk)
    b2d = b.reshape(1, Dout)
    return pl.pallas_call(
        _make_linear_kernel(compute_dtype),
        out_shape=jax.ShapeDtypeStruct((M, Dout), out_dtype),
        grid=grid,
        in_specs=[
            pl.BlockSpec((tm, tk), lambda i, j, k: (i, k)),
            pl.BlockSpec((tk, tn), lambda i, j, k: (k, j)),
            pl.BlockSpec((1, tn), lambda i, j, k: (0, j)),
        ],
        out_specs=pl.BlockSpec((tm, tn), lambda i, j, k: (i, j)),
        scratch_shapes=[pltpu.VMEM((tm, tn), jnp.float32)],
        compiler_params=pltpu.CompilerParams(
            dimension_semantics=("parallel", "parallel", "arbitrary")
        ),
    )(x2d, w_t, b2d)


# ----------------------------------------------------------------------------
# Scaled dot-product attention (per (batch, head, Sq-tile) grid step)
# ----------------------------------------------------------------------------
def _make_sdpa_kernel(has_mask, return_weights, compute_dtype, approx_recip):
    def kernel(*refs):
        q_ref, k_ref, v_ref = refs[0], refs[1], refs[2]
        n_in = 4 if has_mask else 3
        m_ref = refs[3] if has_mask else None
        ctx_ref = refs[n_in]
        w_ref = refs[n_in + 1] if return_weights else None

        q = q_ref[0, 0]  # [tq, dk]
        k = k_ref[0, 0]  # [Sk, dk]
        v = v_ref[0, 0]  # [Sk, dv]

        dk = q.shape[-1]
        scale = 1.0 / math.sqrt(dk)
        # Fold 1/sqrt(dk) into Q (a [tq,dk] multiply, not [tq,Sk]); keep the
        # scaling arithmetic in f32 (v5e VPU has no bf16 elementwise).
        qs = (q.astype(jnp.float32) * scale).astype(compute_dtype)

        # QK^T without materializing a transposed K tile: contract the last
        # dims of both operands directly on the MXU.
        scores = lax.dot_general(
            qs,
            k.astype(compute_dtype),
            dimension_numbers=(((1,), (1,)), ((), ())),
            preferred_element_type=jnp.float32,
        )  # [tq, Sk] f32

        if has_mask:
            m = m_ref[0, 0]  # [tq, Sk], 1.0 attend / 0.0 mask
            scores = jnp.where(m > 0.0, scores, jnp.float32(_NEG_INF))

        # softmax over the key axis (f32)
        scores = scores - jnp.max(scores, axis=-1, keepdims=True)
        e = jnp.exp(scores)
        denom = jnp.sum(e, axis=-1, keepdims=True)
        p = e * pl.reciprocal(denom, approx=approx_recip)

        if return_weights:
            w_ref[0, 0] = p.astype(w_ref.dtype)

        ctx_ref[0, 0] = jnp.dot(
            p.astype(compute_dtype),
            v.astype(compute_dtype),
            preferred_element_type=jnp.float32,
        ).astype(ctx_ref.dtype)

    return kernel


def pallas_sdpa(q, k, v, mask=None, *, return_weights=True,
                compute_dtype=jnp.float32, ctx_dtype=None):
    """q,k,v: [B, H, S, d]; mask: None or [B|1, H|1, Sq, Sk] (1 attend, 0 mask)."""
    B, H, Sq, dk = q.shape
    Sk = k.shape[2]
    dv = v.shape[3]
    ctx_dtype = q.dtype if ctx_dtype is None else ctx_dtype
    tq = _pick_tile(Sq, _ROW_TILES)
    grid = (B, H, Sq // tq)  # qt innermost: K/V block index stays constant -> no re-fetch

    in_specs = [
        pl.BlockSpec((1, 1, tq, dk), lambda b, h, qt: (b, h, qt, 0)),
        pl.BlockSpec((1, 1, Sk, dk), lambda b, h, qt: (b, h, 0, 0)),
        pl.BlockSpec((1, 1, Sk, dv), lambda b, h, qt: (b, h, 0, 0)),
    ]
    inputs = [q, k, v]

    has_mask = mask is not None
    if has_mask:
        mB, mH = int(mask.shape[0]), int(mask.shape[1])
        # broadcast size-1 batch/head mask dims via the index map (no HBM blow-up)
        in_specs.append(
            pl.BlockSpec(
                (1, 1, tq, Sk),
                lambda b, h, qt: (b if mB > 1 else 0, h if mH > 1 else 0, qt, 0),
            )
        )
        inputs.append(mask)

    ctx_shape = jax.ShapeDtypeStruct((B, H, Sq, dv), ctx_dtype)
    ctx_spec = pl.BlockSpec((1, 1, tq, dv), lambda b, h, qt: (b, h, qt, 0))
    if return_weights:
        out_shape = (ctx_shape, jax.ShapeDtypeStruct((B, H, Sq, Sk), jnp.float32))
        out_specs = (ctx_spec,
                     pl.BlockSpec((1, 1, tq, Sk), lambda b, h, qt: (b, h, qt, 0)))
    else:
        out_shape = ctx_shape
        out_specs = ctx_spec

    approx = compute_dtype != jnp.float32
    res = pl.pallas_call(
        _make_sdpa_kernel(has_mask, return_weights, compute_dtype, approx),
        out_shape=out_shape,
        grid=grid,
        in_specs=in_specs,
        out_specs=out_specs,
        compiler_params=pltpu.CompilerParams(
            dimension_semantics=("parallel", "parallel", "parallel")
        ),
    )(*inputs)
    if return_weights:
        ctx, w = res
        return ctx, w
    return res, None


# ----------------------------------------------------------------------------
# Output projection with the head-merge fused into the index maps
#   out[b,s,:] = sum_h ctx[b,h,s,:] @ Wo^T[h*dv:(h+1)*dv, :]  + bias
# ----------------------------------------------------------------------------
def _make_out_proj_kernel(compute_dtype):
    def kernel(x_ref, w_ref, b_ref, o_ref, acc_ref):
        h = pl.program_id(3)

        @pl.when(h == 0)
        def _():
            acc_ref[...] = jnp.zeros_like(acc_ref)

        acc_ref[...] += jnp.dot(
            x_ref[0, 0].astype(compute_dtype),
            w_ref[0].astype(compute_dtype),
            preferred_element_type=jnp.float32,
        )

        @pl.when(h == pl.num_programs(3) - 1)
        def _():
            o_ref[0] = (acc_ref[...] + b_ref[...]).astype(o_ref.dtype)

    return kernel


def pallas_attn_out_proj(ctx, w_t_heads, b, *, compute_dtype=jnp.float32,
                         out_dtype=jnp.float32):
    """ctx: [B, H, Sq, dv]; w_t_heads: [H, dv, Dout]; b: [Dout] -> [B, Sq, Dout]."""
    B, H, Sq, dv = ctx.shape
    Dout = w_t_heads.shape[2]
    tq = _pick_tile(Sq, _ROW_TILES)
    tn = _pick_tile(Dout, _COL_TILES)
    grid = (B, Sq // tq, Dout // tn, H)  # head axis = reduction, innermost
    b2d = b.reshape(1, Dout)
    return pl.pallas_call(
        _make_out_proj_kernel(compute_dtype),
        out_shape=jax.ShapeDtypeStruct((B, Sq, Dout), out_dtype),
        grid=grid,
        in_specs=[
            pl.BlockSpec((1, 1, tq, dv), lambda bb, qt, n, h: (bb, h, qt, 0)),
            pl.BlockSpec((1, dv, tn), lambda bb, qt, n, h: (h, 0, n)),
            pl.BlockSpec((1, tn), lambda bb, qt, n, h: (0, n)),
        ],
        out_specs=pl.BlockSpec((1, tq, tn), lambda bb, qt, n, h: (bb, qt, n)),
        scratch_shapes=[pltpu.VMEM((tq, tn), jnp.float32)],
        compiler_params=pltpu.CompilerParams(
            dimension_semantics=("parallel", "parallel", "parallel", "arbitrary")
        ),
    )(ctx, w_t_heads, b2d)


# ----------------------------------------------------------------------------
# Module
# ----------------------------------------------------------------------------
class AttentionPallas:
    """JAX/Pallas reimplementation of the PyTorch `Attention` module (eval mode).

    compute_dtype=jnp.bfloat16 feeds the MXU bf16 inputs (f32 accumulation);
    softmax / bias / accumulation math stays in f32 on all chips.
    """

    def __init__(self, d_model, num_heads, key, *, compute_dtype=jnp.float32):
        assert d_model % num_heads == 0
        self.d_model = d_model
        self.num_heads = num_heads
        self.d_k = d_model // num_heads
        self.compute_dtype = compute_dtype

        keys = jax.random.split(key, 8)
        bound = 1.0 / math.sqrt(d_model)  # nn.Linear default init bound

        def make_linear(kw, kb):
            w = jax.random.uniform(kw, (d_model, d_model), jnp.float32, -bound, bound)
            b = jax.random.uniform(kb, (d_model,), jnp.float32, -bound, bound)
            return w, b

        # nn.Linear-style [out, in] f32 master weights (used by the reference).
        self.wq, self.bq = make_linear(keys[0], keys[1])
        self.wk, self.bk = make_linear(keys[2], keys[3])
        self.wv, self.bv = make_linear(keys[4], keys[5])
        self.wo, self.bo = make_linear(keys[6], keys[7])

        cd = compute_dtype
        # Pre-transposed (and per-head reshaped for Wo) weights in MXU dtype —
        # no per-call XLA transposes.
        self.wq_t = self.wq.T.astype(cd)
        self.wk_t = self.wk.T.astype(cd)
        self.wv_t = self.wv.T.astype(cd)
        # Fused QKV weights for the self-attention fast path (x read from HBM once).
        self.wqkv_t = jnp.concatenate([self.wq_t, self.wk_t, self.wv_t], axis=1)
        self.bqkv = jnp.concatenate([self.bq, self.bk, self.bv], axis=0)
        self.wo_t_heads = self.wo.T.reshape(num_heads, self.d_k, d_model).astype(cd)

    def _split_heads(self, x, B):
        # [B, S, d_model] -> [B, H, S, d_k]
        S = x.shape[1]
        return x.reshape(B, S, self.num_heads, self.d_k).transpose(0, 2, 1, 3)

    def __call__(self, query, key, value, mask=None, return_weights=True):
        B, Sq, D = query.shape
        Sk = key.shape[1]
        cd = self.compute_dtype

        if query is key and key is value:
            # self-attention: one fused QKV projection (x read once from HBM)
            qkv = pallas_linear(query.reshape(B * Sq, D), self.wqkv_t, self.bqkv,
                                compute_dtype=cd, out_dtype=cd)
            q = qkv[:, :D].reshape(B, Sq, D)
            k = qkv[:, D:2 * D].reshape(B, Sk, D)
            v = qkv[:, 2 * D:].reshape(B, Sk, D)
        else:
            q = pallas_linear(query.reshape(B * Sq, D), self.wq_t, self.bq,
                              compute_dtype=cd, out_dtype=cd).reshape(B, Sq, D)
            k = pallas_linear(key.reshape(B * Sk, D), self.wk_t, self.bk,
                              compute_dtype=cd, out_dtype=cd).reshape(B, Sk, D)
            v = pallas_linear(value.reshape(B * Sk, D), self.wv_t, self.bv,
                              compute_dtype=cd, out_dtype=cd).reshape(B, Sk, D)

        qh = self._split_heads(q, B)
        kh = self._split_heads(k, B)
        vh = self._split_heads(v, B)

        ctx, attn_w = pallas_sdpa(qh, kh, vh, mask,
                                  return_weights=return_weights,
                                  compute_dtype=cd, ctx_dtype=cd)

        # Output projection with the head-merge fused into the kernel
        # (no transpose(1,2).reshape HBM round trip).
        out = pallas_attn_out_proj(ctx, self.wo_t_heads, self.bo,
                                   compute_dtype=cd, out_dtype=jnp.float32)
        return out, attn_w


# ----------------------------------------------------------------------------
# Plain-JAX reference (mirrors the PyTorch module, eval mode)
# ----------------------------------------------------------------------------
def _reference(mod, query, key, value, mask):
    B, Sq, D = query.shape
    q = query @ mod.wq.T + mod.bq
    k = key @ mod.wk.T + mod.bk
    v = value @ mod.wv.T + mod.bv
    qh = mod._split_heads(q, B)
    kh = mod._split_heads(k, B)
    vh = mod._split_heads(v, B)
    scores = jnp.einsum("bhqd,bhkd->bhqk", qh, kh) / math.sqrt(mod.d_k)
    if mask is not None:
        inv = 1.0 - mask
        scores = scores + jnp.where(inv != 0.0, jnp.finfo(jnp.float32).min, 0.0)
    w = jax.nn.softmax(scores, axis=-1)
    ctx = jnp.einsum("bhqk,bhkd->bhqd", w, vh)
    concat = ctx.transpose(0, 2, 1, 3).reshape(B, Sq, D)
    out = concat @ mod.wo.T + mod.bo
    return out, w


if __name__ == "__main__":
    B, S, d_model, num_heads = 2, 8, 32, 4

    root = jax.random.PRNGKey(0)
    k_param, k_q, k_k, k_v = jax.random.split(root, 4)

    module = AttentionPallas(d_model, num_heads, k_param)

    query = jax.random.normal(k_q, (B, S, d_model), jnp.float32)
    key = jax.random.normal(k_k, (B, S, d_model), jnp.float32)
    value = jax.random.normal(k_v, (B, S, d_model), jnp.float32)

    # Causal mask (1.0 attend, 0.0 masked), broadcast to [B, H, S, S].
    causal = jnp.tril(jnp.ones((S, S), jnp.float32))
    mask = jnp.broadcast_to(causal, (B, num_heads, S, S))

    # 1) f32 path, masked cross-attention, weights returned
    out, attn_w = module(query, key, value, mask)
    out = jax.block_until_ready(out)
    attn_w = jax.block_until_ready(attn_w)
    ref_out, ref_w = _reference(module, query, key, value, mask)
    assert out.shape == (B, S, d_model)
    assert attn_w.shape == (B, num_heads, S, S)
    assert jnp.allclose(out, ref_out, atol=1e-4, rtol=1e-4)
    assert jnp.allclose(attn_w, ref_w, atol=1e-4, rtol=1e-4)

    # 2) mask=None path (no mask streamed from HBM)
    out_nm, w_nm = module(query, key, value, None)
    ref_out_nm, ref_w_nm = _reference(module, query, key, value, None)
    assert jnp.allclose(jax.block_until_ready(out_nm), ref_out_nm, atol=1e-4, rtol=1e-4)
    assert jnp.allclose(w_nm, ref_w_nm, atol=1e-4, rtol=1e-4)

    # 3) self-attention fast path (fused QKV projection)
    out_sa, w_sa = module(query, query, query, mask)
    ref_out_sa, ref_w_sa = _reference(module, query, query, query, mask)
    assert jnp.allclose(jax.block_until_ready(out_sa), ref_out_sa, atol=1e-4, rtol=1e-4)
    assert jnp.allclose(w_sa, ref_w_sa, atol=1e-4, rtol=1e-4)

    # 4) weights-writeback skipped (perf path; avoids the O(S^2) HBM store)
    out_nw, w_nw = module(query, key, value, mask, return_weights=False)
    assert w_nw is None
    assert jnp.allclose(jax.block_until_ready(out_nw), ref_out, atol=1e-4, rtol=1e-4)

    # 5) bf16 MXU-input path (f32 accumulation / softmax), loose tolerance
    module_bf16 = AttentionPallas(d_model, num_heads, k_param,
                                  compute_dtype=jnp.bfloat16)
    out_bf, w_bf = module_bf16(query, key, value, mask)
    out_bf = jax.block_until_ready(out_bf)
    assert jnp.allclose(out_bf, ref_out, atol=1e-1, rtol=1e-1)
    assert jnp.allclose(w_bf, ref_w, atol=5e-2, rtol=5e-2)

    print("KERNEL_OK")
</pallas_src>

<mosaic_0001>
module attributes {stable_mosaic.version = 11 : i64} {
  func.func @kernel(%arg0: i32, %arg1: i32, %arg2: i32, %arg3: memref<16x32xf32, #tpu.memory_space<vmem>>, %arg4: memref<32x32xf32, #tpu.memory_space<vmem>>, %arg5: memref<1x32xf32, #tpu.memory_space<vmem>>, %arg6: memref<16x32xf32, #tpu.memory_space<vmem>>, %arg7: memref<16x32xf32, #tpu.memory_space<vmem>>) attributes {dimension_semantics = [#tpu.dimension_semantics<parallel>, #tpu.dimension_semantics<parallel>, #tpu.dimension_semantics<arbitrary>], iteration_bounds = array<i64: 1, 1, 1>, scalar_prefetch = 0 : i64, scratch_operands = 1 : i64, tpu.core_type = #tpu.core_type<tc>, window_params = [{transform_indices = @transform_0, window_bounds = array<i64: 16, 32>}, {transform_indices = @transform_1, window_bounds = array<i64: 32, 32>}, {transform_indices = @transform_2, window_bounds = array<i64: 1, 32>}, {transform_indices = @transform_3, window_bounds = array<i64: 16, 32>}]} {
    %c0_i32 = arith.constant 0 : i32
    %0 = arith.cmpi eq, %arg2, %c0_i32 : i32
    %1 = arith.extui %0 : i1 to i32
    %c0_i32_0 = arith.constant 0 : i32
    %2 = arith.cmpi ne, %1, %c0_i32_0 : i32
    scf.if %2 {
      %cst_10 = arith.constant 0.000000e+00 : f32
      %12 = vector.broadcast %cst_10 : f32 to vector<16x32xf32>
      %c0_11 = arith.constant 0 : index
      %c0_12 = arith.constant 0 : index
      %13 = vector.load %arg7[%c0_11, %c0_12] : memref<16x32xf32, #tpu.memory_space<vmem>>, vector<16x32xf32>
      tpu.vector_store %arg7[%c0_11, %c0_12], %12 {strides = array<i32>} : memref<16x32xf32, #tpu.memory_space<vmem>>, vector<16x32xf32>,
    } else {
    }
    %c0 = arith.constant 0 : index
    %c0_1 = arith.constant 0 : index
    %3 = vector.load %arg7[%c0, %c0_1] : memref<16x32xf32, #tpu.memory_space<vmem>>, vector<16x32xf32>
    %c0_2 = arith.constant 0 : index
    %c0_3 = arith.constant 0 : index
    %4 = vector.load %arg3[%c0_2, %c0_3] : memref<16x32xf32, #tpu.memory_space<vmem>>, vector<16x32xf32>
    %c0_4 = arith.constant 0 : index
    %c0_5 = arith.constant 0 : index
    %5 = vector.load %arg4[%c0_4, %c0_5] : memref<32x32xf32, #tpu.memory_space<vmem>>, vector<32x32xf32>
    %cst = arith.constant dense<0.000000e+00> : vector<16x32xf32>
    %6 = tpu.matmul %4, %5, %cst {dimension_numbers = #tpu.dot_dimension_numbers<[1], [0], [0], [1], [0, 0, 1, 1], [], []>} : vector<16x32xf32>, vector<32x32xf32>, vector<16x32xf32> -> vector<16x32xf32>
    %7 = arith.addf %3, %6 : vector<16x32xf32>
    %c0_6 = arith.constant 0 : index
    %c0_7 = arith.constant 0 : index
    %8 = vector.load %arg7[%c0_6, %c0_7] : memref<16x32xf32, #tpu.memory_space<vmem>>, vector<16x32xf32>
    tpu.vector_store %arg7[%c0_6, %c0_7], %7 {strides = array<i32>} : memref<16x32xf32, #tpu.memory_space<vmem>>, vector<16x32xf32>,
    %c0_i32_8 = arith.constant 0 : i32
    %9 = arith.cmpi eq, %arg2, %c0_i32_8 : i32
    %10 = arith.extui %9 : i1 to i32
    %c0_i32_9 = arith.constant 0 : i32
    %11 = arith.cmpi ne, %10, %c0_i32_9 : i32
    scf.if %11 {
      %c0_10 = arith.constant 0 : index
      %c0_11 = arith.constant 0 : index
      %12 = vector.load %arg7[%c0_10, %c0_11] : memref<16x32xf32, #tpu.memory_space<vmem>>, vector<16x32xf32>
      %c0_12 = arith.constant 0 : index
      %c0_13 = arith.constant 0 : index
      %13 = vector.load %arg5[%c0_12, %c0_13] : memref<1x32xf32, #tpu.memory_space<vmem>>, vector<1x32xf32>
      %14 = vector.broadcast %13 : vector<1x32xf32> to vector<16x32xf32>
      %15 = arith.addf %12, %14 : vector<16x32xf32>
      %c0_14 = arith.constant 0 : index
      %c0_15 = arith.constant 0 : index
      %16 = vector.load %arg6[%c0_14, %c0_15] : memref<16x32xf32, #tpu.memory_space<vmem>>, vector<16x32xf32>
      tpu.vector_store %arg6[%c0_14, %c0_15], %15 {strides = array<i32>} : memref<16x32xf32, #tpu.memory_space<vmem>>, vector<16x32xf32>,
    } else {
    }
    return
  }
  func.func @transform_0(%arg0: i32, %arg1: i32, %arg2: i32) -> (i32, i32) {
    %c0_i32 = arith.constant 0 : i32
    return %arg0, %arg2 : i32, i32
  }
  func.func @transform_1(%arg0: i32, %arg1: i32, %arg2: i32) -> (i32, i32) {
    %c0_i32 = arith.constant 0 : i32
    return %arg2, %arg1 : i32, i32
  }
  func.func @transform_2(%arg0: i32, %arg1: i32, %arg2: i32) -> (i32, i32) {
    %c0_i32 = arith.constant 0 : i32
    %c0_i32_0 = arith.constant 0 : i32
    return %c0_i32, %arg1 : i32, i32
  }
  func.func @transform_3(%arg0: i32, %arg1: i32, %arg2: i32) -> (i32, i32) {
    %c0_i32 = arith.constant 0 : i32
    return %arg0, %arg1 : i32, i32
  }
}

</mosaic_0001>

<bundles_post_ra>
// kernel: tpu_custom_call.1
= control target key start
LH: loop header
LB: loop body
LE: loop exit
PB: predicated region body
PF: predicated region fallthrough
CT: control target
= control target key end

     0   :  { %8 = vsyncpa [#allocation4], 0  ;;  %s325_s0 = inlined_call_operand.hbm [shape: f32[16,32], index: 0, kind: input, shape index: {}]   ;;  %s326_s1 = inlined_call_operand.hbm [shape: f32[32,32], index: 1, kind: input, shape index: {}]   ;;  %s327_s2 = inlined_call_operand.vmem [shape: f32[1,32], index: 2, kind: input, shape index: {}]   ;;  %s328_s3 = inlined_call_operand.hbm [shape: f32[16,32], index: 3, kind: output, shape index: {}]  }
   0x1   :  { %9 = vsyncpa [#allocation7], 0 }
   0x2   :  { %10 = vsyncpa [#allocation5], 0  ;;  %s270_s12 = smov [#allocation3]  }
   0x3   :  { %s16_s13 = sshll.u32 %s270_s12, 4  ;;  %s17_s13 = int_to_ptr.vmem [resolvable:$true] %s16_s13 }
   0x4   :  { %s212_s14 = scalar_lea.vmem %s17_s13, 256  ;;  %p217_p1 = scmp.lt.s32.totalorder %s17_s13, %s17_s13 }
   0x5   :  { %p213_p0 = scmp.ne.s32.totalorder %s17_s13, %s212_s14  ;;  %p218_p2 = scmp.lt.s32.totalorder %s212_s14, %s212_s14 }
   0x7   :  { %p219_p3 = por %p218_p2, %p217_p1 }
   0x9   :  { %p220_p4 = pnand %p219_p3, %p213_p0 }
   0xb   :  { %223 = shalt.err (!%p220_p4)
}
   0xc   :  { %s271_s15 = smov 128   ;;  %s272_s16 = smov 8  }
   0xd   :  { %22 = dma.hbm_to_vmem [thread:$0]  %s325_s0, 256, %s17_s13, [#allocation4], %s271_s15, %s271_s15, %s272_s16  }
   0xe   :  { %s273_s19 = smov [#allocation6]  }
   0xf   :  { %s28_s20 = sshll.u32 %s273_s19, 4  ;;  %s29_s20 = int_to_ptr.vmem [resolvable:$true] %s28_s20 }
  0x10   :  { %s232_s21 = scalar_lea.vmem %s29_s20, 512  ;;  %p237_p6 = scmp.lt.s32.totalorder %s29_s20, %s29_s20 }
  0x11   :  { %p233_p5 = scmp.ne.s32.totalorder %s29_s20, %s232_s21  ;;  %p238_p7 = scmp.lt.s32.totalorder %s232_s21, %s232_s21 }
  0x13   :  { %p239_p8 = por %p238_p7, %p237_p6 }
  0x15   :  { %p240_p9 = pnand %p239_p8, %p233_p5 }
  0x17   :  { %243 = shalt.err (!%p240_p9)
}
  0x18   :  { %34 = dma.hbm_to_vmem [thread:$0]  %s326_s1, 512, %s29_s20, [#allocation7], %s271_s15, %s271_s15, %s272_s16  }
  0x19   :  { %264 = dma.done.wait [#allocation4], 256  }
  0x1a   :  { %265 = vsyncadd [#allocation4], 4294967040 }
  0x1b   :  { %266 = dma.done.wait [#allocation7], 512  }
  0x1c   :  { %267 = vsyncadd [#allocation7], 4294966784  ;;  %vm47_vm0 = vcmask 261120   ;;  %v274_v0 = vmov 0.0   ;;  %v57_v1 = vld [vmem:[#allocation6 + $0x18] sm:$0xff]  ;;  %v56_v2 = vld [vmem:[#allocation6 + $0x10] sm:$0xff] }
  0x1d   :  { %49 = vst.msk [vmem:[#allocation2 + $0x8] sm:$0xff] %vm47_vm0, %v274_v0  ;;  %48 = vst.msk [vmem:[#allocation2] sm:$0xff] %vm47_vm0, %v274_v0  ;;  %187 = vmatprep.subr.mxu0 %v57_v1  ;;  %v52_v3 = vld [vmem:[#allocation3] sm:$0xff]  ;;  %v55_v4 = vld [vmem:[#allocation6 + $0x8] sm:$0xff]  ;;  %s275_s24 = smov [#allocation8]  }
  0x1e   :  { %188 = vmatpush3.msra.mxu0 %v57_v1  ;;  %195 = vmatprep.mubr.msk.f32.mxu0 %vm47_vm0, %v52_v3  ;;  %v54_v5 = vld [vmem:[#allocation6] sm:$0xff]  ;;  %v53_v6 = vld [vmem:[#allocation3 + $0x8] sm:$0xff]  ;;  %s165_s25 = sshll.u32 %s275_s24, 4  ;;  %s166_s25 = int_to_ptr.vmem [resolvable:$true] %s165_s25 }
  0x1f   :  { %189 = vmatprep.subr.mxu0 %v56_v2  ;;  %v180_v13 = vld [vmem:[%s327_s2] ss:$0 sm:$0xff]  ;;  %s244_s26 = scalar_lea.vmem %s166_s25, 256  ;;  %p249_p11 = scmp.lt.s32.totalorder %s166_s25, %s166_s25 }
  0x20   :  { %190 = vmatpush3.msra.mxu0 %v56_v2  ;;  %p245_p10 = scmp.ne.s32.totalorder %s166_s25, %s244_s26  ;;  %p250_p12 = scmp.lt.s32.totalorder %s244_s26, %s244_s26 }
  0x21   :  { %191 = vmatprep.subr.mxu0 %v55_v4 }
  0x22   :  { %192 = vmatpush3.msra.mxu0 %v55_v4  ;;  %p251_p13 = por %p250_p12, %p249_p11 }
  0x23   :  { %193 = vmatprep.subr.mxu0 %v54_v5 }
  0x24   :  { %194 = vmatpush3.msra.mxu0 %v54_v5  ;;  %v51_v7 = vld [vmem:[#allocation2 + $0x8] sm:$0xff]  ;;  %v50_v9 = vld [vmem:[#allocation2] sm:$0xff]  ;;  %p252_p0 = pnand %p251_p13, %p245_p10 }
  0x25   :  { %196 = vmatmul.mubr.msk.f32.vlgmr.msra.gmra.mxu0 %vm47_vm0, %v53_v6 }
  0xe5   :  { %v197_v8 = vpop.f32.mrf.mxu0 }
  0xe6   :  { %v141_v10 = vadd.f32 %v197_v8, %v51_v7 }
  0xe7   :  { %v131_v11 = vpop.f32.mrf.mxu0 }
  0xe8   :  { %143 = vst.msk [vmem:[#allocation2 + $0x8] sm:$0xff] %vm47_vm0, %v141_v10  ;;  %v140_v12 = vadd.f32 %v131_v11, %v50_v9 }
  0xea   :  { %142 = vst.msk [vmem:[#allocation2] sm:$0xff] %vm47_vm0, %v140_v12 }
  0xef   :  { %v148_v14 = vld [vmem:[#allocation2 + $0x8] sm:$0xff] }
  0xf0   :  { %v157_v15 = vadd.f32 %v180_v13, %v148_v14 }
  0xf1   :  { %v147_v16 = vld [vmem:[#allocation2] sm:$0xff] }
  0xf2   :  { %v156_v17 = vadd.f32 %v180_v13, %v147_v16  ;;  %159 = vst.msk [vmem:[#allocation8 + $0x8] sm:$0xff] %vm47_vm0, %v157_v15 }
  0xf4   :  { %158 = vst.msk [vmem:[#allocation8] sm:$0xff] %vm47_vm0, %v156_v17 }
  0xf5   :  { %255 = shalt.err (!%p252_p0)
}
  0xf6   :  { %171 = dma.vmem_to_hbm [thread:$0]  %s166_s25, 256, %s328_s3, [#allocation5], %s271_s15, %s271_s15, %s272_s16  }
  0xf7   :  { %268 = dma.done.wait [#allocation5], 256  }
  0xf8   :  { %269 = vsyncadd [#allocation5], 4294967040 }
  0xf9   :  { %175 = vsyncpa [#allocation4], 1 }
  0xfa   :  { %176 = vsyncpa [#allocation7], 1 }
  0xfb   :  { %177 = vsyncpa [#allocation5], 1 }

</bundles_post_ra>
